<compile_context>
chip_gen: v6e
topology: v6e:2x2x1
jax: 0.10.0
libtpu: 0.0.40
codegen_flags: <defaults>
</compile_context>

<pallas_src>
import functools

import jax
import jax.numpy as jnp
from jax.experimental import pallas as pl
from jax.experimental.pallas import tpu as pltpu


# ------------------------- activation -------------------------

def _activation(x, kind):
    if kind == "leaky":
        # torch.nn.LeakyReLU default negative_slope = 0.01
        return jnp.where(x > 0, x, 0.01 * x)
    elif kind == "tanh":
        return jnp.tanh(x)
    else:
        raise ValueError(kind)


# ------------------------- Pallas kernels -------------------------

def _mlp2_kernel(x_ref, w1_ref, b1_ref, wout_ref, bout_ref, o_ref, *, act):
    # x: (TB, D) native dtype, w1: (D, Hp) bf16, b1: (1, Hp) f32,
    # wout: (1, Hp) f32, bout: (1,) f32 in SMEM, o: (TB, 1) f32
    x = x_ref[...].astype(jnp.bfloat16)          # in-kernel cast (VPU, free-ish)
    h = jnp.dot(x, w1_ref[...], preferred_element_type=jnp.float32)
    h = _activation(h + b1_ref[...], act)
    # N=1 output "matmul" as VPU multiply + XLU lane reduction.
    out = jnp.sum(h * wout_ref[...], axis=-1, keepdims=True) + bout_ref[0]
    o_ref[...] = out.astype(o_ref.dtype)


def _mlp3_kernel(x_ref, w1_ref, b1_ref, w2_ref, b2_ref, wout_ref, bout_ref,
                 o_ref, *, act):
    # x: (TB, D) native dtype, w1: (D, Hp) bf16, w2: (Hp, Hp) bf16,
    # wout: (1, Hp) f32, bout: (1,) f32 in SMEM
    x = x_ref[...].astype(jnp.bfloat16)
    h = jnp.dot(x, w1_ref[...], preferred_element_type=jnp.float32)
    h = _activation(h + b1_ref[...], act)
    h = jnp.dot(h.astype(jnp.bfloat16), w2_ref[...],
                preferred_element_type=jnp.float32)
    h = _activation(h + b2_ref[...], act)
    out = jnp.sum(h * wout_ref[...], axis=-1, keepdims=True) + bout_ref[0]
    o_ref[...] = out.astype(o_ref.dtype)


# ------------------------- param padding (lane-dense hidden) -------------------------

_LANE = 128


def _round_up(v, m):
    return ((v + m - 1) // m) * m


def _pad_params(params, architecture_name):
    """Zero-pad hidden dim to a multiple of 128 lanes; bf16 for MXU operands.

    Padding is semantics-preserving: padded w1 columns / w2 rows-cols / w_out
    lanes are zero, so padded hidden lanes never contribute to the output.
    """
    h = params["w1"].shape[1]
    hp = _round_up(h, _LANE)

    def pad_cols(a):
        return jnp.pad(a, ((0, 0), (0, hp - a.shape[1])))

    def pad_rows(a):
        return jnp.pad(a, ((0, hp - a.shape[0]), (0, 0)))

    out = {
        "w1": pad_cols(params["w1"]).astype(jnp.bfloat16),
        "b1": pad_cols(params["b1"]).astype(jnp.float32),
    }
    if architecture_name == "2L":
        out["w_out_row"] = pad_cols(params["w2"].reshape(1, -1)).astype(jnp.float32)
        out["b_out"] = params["b2"].reshape(-1).astype(jnp.float32)   # (1,) SMEM
    elif architecture_name == "3L":
        out["w2"] = pad_rows(pad_cols(params["w2"])).astype(jnp.bfloat16)
        out["b2"] = pad_cols(params["b2"]).astype(jnp.float32)
        out["w_out_row"] = pad_cols(params["w3"].reshape(1, -1)).astype(jnp.float32)
        out["b_out"] = params["b3"].reshape(-1).astype(jnp.float32)
    else:
        raise ValueError(architecture_name)
    return out, hp


# ------------------------- batch-tile selection -------------------------

def _choose_batch_tile(n, d, x_itemsize, batch_tile):
    """Pick a batch tile: multiple of 8 (or the full tiny batch), VMEM-safe,
    and yielding >=2 grid steps when possible (so both v7x TCs stream)."""
    # Budget for double-buffered x tile + double-buffered f32 out tile.
    x_budget = 48 * 1024 * 1024
    per_row = 2 * d * x_itemsize + 2 * 4
    tb_cap = max(8, ((x_budget // per_row) // 8) * 8)
    tb = min(int(batch_tile), tb_cap)
    if tb >= n:
        if n >= 16:
            tb = _round_up(pl.cdiv(n, 2), 8)     # >=2 steps for megacore sharding
        else:
            tb = n                               # tiny batch: single full-dim block
    else:
        tb = max(8, (tb // 8) * 8)
    return tb


# ------------------------- wrapper -------------------------

def deterministic_network_forward(x, params, architecture_name="2L",
                                  activation_function="leaky",
                                  batch_tile=4096):
    """Forward pass of DeterministicNetwork as a fused, batch-tiled Pallas TPU kernel.

    x: any shape (N, ...) — flattened to (N, prod(...)) like nn.Flatten().
    Returns logits of shape (N, 1), float32.
    """
    n = x.shape[0]
    x2d = x.reshape(n, -1)                 # stream native dtype; cast in-kernel
    d = x2d.shape[1]
    x_itemsize = jnp.dtype(x2d.dtype).itemsize

    pp, hp = _pad_params(params, architecture_name)

    tb = _choose_batch_tile(n, d, x_itemsize, batch_tile)
    grid = (pl.cdiv(n, tb),)

    def const2d(shape):
        return pl.BlockSpec(shape, lambda i: (0, 0))

    x_spec = pl.BlockSpec((tb, d), lambda i: (i, 0))
    out_spec = pl.BlockSpec((tb, 1), lambda i: (i, 0))
    smem_spec = pl.BlockSpec(memory_space=pltpu.MemorySpace.SMEM)

    if architecture_name == "2L":
        args = (x2d, pp["w1"], pp["b1"], pp["w_out_row"], pp["b_out"])
        in_specs = [x_spec,
                    const2d((d, hp)), const2d((1, hp)),
                    const2d((1, hp)), smem_spec]
        kernel = functools.partial(_mlp2_kernel, act=activation_function)
        flops = 2 * n * d * hp + 2 * n * hp
        n_act = 1
    elif architecture_name == "3L":
        args = (x2d, pp["w1"], pp["b1"], pp["w2"], pp["b2"],
                pp["w_out_row"], pp["b_out"])
        in_specs = [x_spec,
                    const2d((d, hp)), const2d((1, hp)),
                    const2d((hp, hp)), const2d((1, hp)),
                    const2d((1, hp)), smem_spec]
        kernel = functools.partial(_mlp3_kernel, act=activation_function)
        flops = 2 * n * d * hp + 2 * n * hp * hp + 2 * n * hp
        n_act = 2
    else:
        raise ValueError(architecture_name)

    weight_bytes = sum(int(a.size) * a.dtype.itemsize for a in args[1:])
    bytes_accessed = n * d * x_itemsize + weight_bytes + n * 4
    transcendentals = n * hp * n_act if activation_function == "tanh" else 0

    # VMEM footprint: double-buffered x + out tiles, double-buffered resident
    # weights, plus margin.  Clamp comfortably under v7x's 64 MiB/TC.
    vmem_need = 2 * tb * d * x_itemsize + 2 * tb * 4 + 2 * weight_bytes + (4 << 20)
    vmem_limit = int(min(56 << 20, max(32 << 20, vmem_need)))

    return pl.pallas_call(
        kernel,
        out_shape=jax.ShapeDtypeStruct((n, 1), jnp.float32),
        grid=grid,
        in_specs=in_specs,
        out_specs=out_spec,
        compiler_params=pltpu.CompilerParams(
            dimension_semantics=("parallel",),
            vmem_limit_bytes=vmem_limit),
        cost_estimate=pl.CostEstimate(flops=flops,
                                      transcendentals=transcendentals,
                                      bytes_accessed=bytes_accessed),
    )(*args)


# ------------------------- deterministic param init -------------------------

def _linear_init(key, fan_in, fan_out):
    # Mirrors torch.nn.Linear default init: U(-1/sqrt(fan_in), 1/sqrt(fan_in))
    kw, kb = jax.random.split(key)
    bound = 1.0 / jnp.sqrt(jnp.float32(fan_in))
    w = jax.random.uniform(kw, (fan_in, fan_out), jnp.float32, -bound, bound)
    b = jax.random.uniform(kb, (1, fan_out), jnp.float32, -bound, bound)
    return w, b


def init_params(key, input_size, hidden_size, architecture_name="2L"):
    output_size = 1
    if architecture_name == "2L":
        k1, k2 = jax.random.split(key, 2)
        w1, b1 = _linear_init(k1, input_size, hidden_size)
        w2, b2 = _linear_init(k2, hidden_size, output_size)
        return {"w1": w1, "b1": b1, "w2": w2, "b2": b2}
    elif architecture_name == "3L":
        k1, k2, k3 = jax.random.split(key, 3)
        w1, b1 = _linear_init(k1, input_size, hidden_size)
        w2, b2 = _linear_init(k2, hidden_size, hidden_size)
        w3, b3 = _linear_init(k3, hidden_size, output_size)
        return {"w1": w1, "b1": b1, "w2": w2, "b2": b2, "w3": w3, "b3": b3}
    else:
        raise ValueError(architecture_name)


# ------------------------- pure-JAX reference -------------------------

def _reference_forward(x, params, architecture_name, activation_function):
    """fp32 reference mirroring the kernel's bf16 rounding of MXU operands."""
    n = x.shape[0]

    def bf(a):
        return a.astype(jnp.bfloat16).astype(jnp.float32)

    def act(v):
        return jnp.where(v > 0, v, 0.01 * v) if activation_function == "leaky" \
            else jnp.tanh(v)

    hi = "highest"
    x2d = bf(x.reshape(n, -1))
    h = act(jnp.dot(x2d, bf(params["w1"]), precision=hi) + params["b1"])
    if architecture_name == "2L":
        return jnp.dot(h, params["w2"], precision=hi) + params["b2"]
    h = act(jnp.dot(bf(h), bf(params["w2"]), precision=hi) + params["b2"])
    return jnp.dot(h, params["w3"], precision=hi) + params["b3"]


# ------------------------- main -------------------------

if __name__ == "__main__":
    key = jax.random.PRNGKey(0)
    kx, kp2, kp3, kxb = jax.random.split(key, 4)

    # NCHW-like input, flattened by the wrapper exactly like nn.Flatten().
    batch, C, H, W = 2, 4, 16, 16
    input_size = C * H * W          # 1024
    hidden_size = 32

    x = jax.random.normal(kx, (batch, C, H, W), jnp.float32)

    # 2L + LeakyReLU
    params_2l = init_params(kp2, input_size, hidden_size, "2L")
    out_2l = deterministic_network_forward(x, params_2l, "2L", "leaky")
    jax.block_until_ready(out_2l)
    assert out_2l.shape == (batch, 1)
    ref_2l = _reference_forward(x, params_2l, "2L", "leaky")
    assert jnp.allclose(out_2l, ref_2l, atol=1e-2, rtol=1e-2), "2L mismatch"

    # 3L + Tanh (other architecture / activation branch)
    params_3l = init_params(kp3, input_size, hidden_size, "3L")
    out_3l = deterministic_network_forward(x, params_3l, "3L", "tanh")
    jax.block_until_ready(out_3l)
    assert out_3l.shape == (batch, 1)
    ref_3l = _reference_forward(x, params_3l, "3L", "tanh")
    assert jnp.allclose(out_3l, ref_3l, atol=1e-2, rtol=1e-2), "3L mismatch"

    # Default tiling on a moderate batch: exercises the >=2-grid-steps split
    # (tb=32 -> grid=2) with a ragged last block and masked edge stores.
    batch_big = 50
    x_big = jax.random.normal(kxb, (batch_big, C, H, W), jnp.float32)
    out_big = deterministic_network_forward(x_big, params_2l, "2L", "leaky")
    jax.block_until_ready(out_big)
    assert out_big.shape == (batch_big, 1)
    ref_big = _reference_forward(x_big, params_2l, "2L", "leaky")
    assert jnp.allclose(out_big, ref_big, atol=1e-2, rtol=1e-2), "split 2L mismatch"

    # Explicit small tile: multi-step grid with resident weights (const index_maps).
    out_tiled = deterministic_network_forward(x_big, params_3l, "3L", "leaky",
                                              batch_tile=16)
    jax.block_until_ready(out_tiled)
    assert out_tiled.shape == (batch_big, 1)
    ref_tiled = _reference_forward(x_big, params_3l, "3L", "leaky")
    assert jnp.allclose(out_tiled, ref_tiled, atol=1e-2, rtol=1e-2), "tiled 3L mismatch"

    print("KERNEL_OK")
</pallas_src>

<mosaic_0001>
module attributes {stable_mosaic.version = 11 : i64} {
  func.func @_mlp2_kernel(%arg0: i32, %arg1: memref<2x1024xf32, #tpu.memory_space<vmem>>, %arg2: memref<1024x128xbf16, #tpu.memory_space<vmem>>, %arg3: memref<1x128xf32, #tpu.memory_space<vmem>>, %arg4: memref<1x128xf32, #tpu.memory_space<vmem>>, %arg5: memref<1xf32, #tpu.memory_space<smem>>, %arg6: memref<2x1xf32, #tpu.memory_space<vmem>>) attributes {dimension_semantics = [#tpu.dimension_semantics<parallel>], iteration_bounds = array<i64: 1>, scalar_prefetch = 0 : i64, scratch_operands = 0 : i64, tpu.core_type = #tpu.core_type<tc>, window_params = [{transform_indices = @transform_0, window_bounds = array<i64: 2, 1024>}, {pipeline_mode = #tpu.pipeline_mode<synchronous>, transform_indices = @transform_1, window_bounds = array<i64: 1024, 128>}, {pipeline_mode = #tpu.pipeline_mode<synchronous>, transform_indices = @transform_2, window_bounds = array<i64: 1, 128>}, {pipeline_mode = #tpu.pipeline_mode<synchronous>, transform_indices = @transform_3, window_bounds = array<i64: 1, 128>}, {transform_indices = @transform_4, window_bounds = array<i64: 1>}, {transform_indices = @transform_5, window_bounds = array<i64: 2, 1>}]} {
    %c0 = arith.constant 0 : index
    %c0_0 = arith.constant 0 : index
    %0 = vector.load %arg1[%c0, %c0_0] : memref<2x1024xf32, #tpu.memory_space<vmem>>, vector<2x1024xf32>
    %1 = arith.truncf %0 : vector<2x1024xf32> to vector<2x1024xbf16>
    %c0_1 = arith.constant 0 : index
    %c0_2 = arith.constant 0 : index
    %2 = vector.load %arg2[%c0_1, %c0_2] : memref<1024x128xbf16, #tpu.memory_space<vmem>>, vector<1024x128xbf16>
    %cst = arith.constant dense<0.000000e+00> : vector<2x128xf32>
    %3 = tpu.matmul %1, %2, %cst {dimension_numbers = #tpu.dot_dimension_numbers<[1], [0], [0], [1], [0, 0, 1, 1], [], []>} : vector<2x1024xbf16>, vector<1024x128xbf16>, vector<2x128xf32> -> vector<2x128xf32>
    %c0_3 = arith.constant 0 : index
    %c0_4 = arith.constant 0 : index
    %4 = vector.load %arg3[%c0_3, %c0_4] : memref<1x128xf32, #tpu.memory_space<vmem>>, vector<1x128xf32>
    %5 = vector.broadcast %4 : vector<1x128xf32> to vector<2x128xf32>
    %6 = arith.addf %3, %5 : vector<2x128xf32>
    %cst_5 = arith.constant 0.000000e+00 : f32
    %7 = vector.broadcast %cst_5 : f32 to vector<2x128xf32>
    %8 = arith.cmpf ogt, %6, %7 : vector<2x128xf32>
    %cst_6 = arith.constant 0.00999999977 : f32
    %9 = vector.broadcast %cst_6 : f32 to vector<2x128xf32>
    %10 = arith.mulf %9, %6 : vector<2x128xf32>
    %11 = arith.select %8, %6, %10 : vector<2x128xi1>, vector<2x128xf32>
    %c0_7 = arith.constant 0 : index
    %c0_8 = arith.constant 0 : index
    %12 = vector.load %arg4[%c0_7, %c0_8] : memref<1x128xf32, #tpu.memory_space<vmem>>, vector<1x128xf32>
    %13 = vector.broadcast %12 : vector<1x128xf32> to vector<2x128xf32>
    %14 = arith.mulf %11, %13 : vector<2x128xf32>
    %cst_9 = arith.constant dense<0.000000e+00> : vector<2xf32>
    %15 = vector.multi_reduction <add>, %14, %cst_9 [1] : vector<2x128xf32> to vector<2xf32>
    %16 = vector.shape_cast %15 : vector<2xf32> to vector<2x1xf32>
    %c0_10 = arith.constant 0 : index
    %17 = memref.load %arg5[%c0_10] : memref<1xf32, #tpu.memory_space<smem>>
    %18 = vector.broadcast %17 : f32 to vector<2x1xf32>
    %19 = arith.addf %16, %18 : vector<2x1xf32>
    %c0_11 = arith.constant 0 : index
    %c0_12 = arith.constant 0 : index
    %20 = vector.load %arg6[%c0_11, %c0_12] : memref<2x1xf32, #tpu.memory_space<vmem>>, vector<2x1xf32>
    tpu.vector_store %arg6[%c0_11, %c0_12], %19 {strides = array<i32>} : memref<2x1xf32, #tpu.memory_space<vmem>>, vector<2x1xf32>,
    return
  }
  func.func @transform_0(%arg0: i32) -> (i32, i32) {
    %c0_i32 = arith.constant 0 : i32
    %c0_i32_0 = arith.constant 0 : i32
    return %arg0, %c0_i32 : i32, i32
  }
  func.func @transform_1(%arg0: i32) -> (i32, i32) {
    %c0_i32 = arith.constant 0 : i32
    %c0_i32_0 = arith.constant 0 : i32
    %c0_i32_1 = arith.constant 0 : i32
    return %c0_i32, %c0_i32_0 : i32, i32
  }
  func.func @transform_2(%arg0: i32) -> (i32, i32) {
    %c0_i32 = arith.constant 0 : i32
    %c0_i32_0 = arith.constant 0 : i32
    %c0_i32_1 = arith.constant 0 : i32
    return %c0_i32, %c0_i32_0 : i32, i32
  }
  func.func @transform_3(%arg0: i32) -> (i32, i32) {
    %c0_i32 = arith.constant 0 : i32
    %c0_i32_0 = arith.constant 0 : i32
    %c0_i32_1 = arith.constant 0 : i32
    return %c0_i32, %c0_i32_0 : i32, i32
  }
  func.func @transform_4(%arg0: i32) -> i32 {
    %c0_i32 = arith.constant 0 : i32
    %c0_i32_0 = arith.constant 0 : i32
    return %c0_i32 : i32
  }
  func.func @transform_5(%arg0: i32) -> (i32, i32) {
    %c0_i32 = arith.constant 0 : i32
    %c0_i32_0 = arith.constant 0 : i32
    return %arg0, %c0_i32 : i32, i32
  }
}

</mosaic_0001>

<bundles_post_ra>
// kernel: tpu_custom_call.1
= control target key start
LH: loop header
LB: loop body
LE: loop exit
PB: predicated region body
PF: predicated region fallthrough
CT: control target
= control target key end

     0   :  { %11 = vsyncpa [#allocation4], 0  ;;  %s1135_s0 = inlined_call_operand.hbm [shape: f32[2,1024], index: 0, kind: input, shape index: {}]   ;;  %s1136_s1 = inlined_call_operand.hbm [shape: bf16[1024,128], index: 1, kind: input, shape index: {}]   ;;  %s1137_s2 = inlined_call_operand.vmem [shape: f32[1,128], index: 2, kind: input, shape index: {}]   ;;  %s1138_s3 = inlined_call_operand.vmem [shape: f32[1,128], index: 3, kind: input, shape index: {}]   ;;  %s1139_s4 = inlined_call_operand.<no memory space> [shape: f32[1], index: 4, kind: input, shape index: {}]   ;;  %s1140_s5 = inlined_call_operand.vmem [shape: f32[2,1], index: 5, kind: output, shape index: {}]  }
   0x1   :  { %12 = vsyncpa [#allocation6], 0  ;;  %s1076_s18 = smov [#allocation3]   ;;  %s1077_s20 = smov [#allocation5]  }
   0x2   :  { %s19_s19 = sshll.u32 %s1076_s18, 4  ;;  %s28_s21 = sshll.u32 %s1077_s20, 4  ;;  %s20_s19 = int_to_ptr.vmem [resolvable:$true] %s19_s19  ;;  %s29_s21 = int_to_ptr.vmem [resolvable:$true] %s28_s21 }
   0x3   :  { %s1040_s22 = scalar_lea.vmem %s20_s19, 256  ;;  %p1045_p1 = scmp.lt.s32.totalorder %s20_s19, %s20_s19 }
   0x4   :  { %p1041_p0 = scmp.ne.s32.totalorder %s20_s19, %s1040_s22  ;;  %p1046_p2 = scmp.lt.s32.totalorder %s1040_s22, %s1040_s22 }
   0x6   :  { %p1047_p3 = por %p1046_p2, %p1045_p1 }
   0x8   :  { %p1048_p4 = pnand %p1047_p3, %p1041_p0 }
   0xa   :  { %1051 = shalt.err (!%p1048_p4)
}
   0xb   :  { %22 = dma.hbm_to_vmem [thread:$0]  %s1135_s0, 256, %s20_s19, [#allocation4]  }
   0xc   :  { %s1060_s25 = scalar_lea.vmem %s29_s21, 8192  ;;  %p1065_p6 = scmp.lt.s32.totalorder %s29_s21, %s29_s21 }
   0xd   :  { %p1061_p5 = scmp.ne.s32.totalorder %s29_s21, %s1060_s25  ;;  %p1066_p7 = scmp.lt.s32.totalorder %s1060_s25, %s1060_s25 }
   0xf   :  { %p1067_p8 = por %p1066_p7, %p1065_p6 }
  0x11   :  { %p1068_p9 = pnand %p1067_p8, %p1061_p5 }
  0x13   :  { %1071 = shalt.err (!%p1068_p9)
}
  0x14   :  { %s1078_s26 = smov 64   ;;  %s1079_s27 = smov 4  }
  0x15   :  { %34 = dma.hbm_to_vmem [thread:$0]  %s1136_s1, 8192, %s29_s21, [#allocation6], %s1078_s26, %s1078_s26, %s1079_s27  }
  0x16   :  { %1072 = dma.done.wait [#allocation4], 256  }
  0x17   :  { %1073 = vsyncadd [#allocation4], 4294967040 }
  0x18   :  { %1074 = dma.done.wait [#allocation6], 8192  }
  0x19   :  { %1075 = vsyncadd [#allocation6], 4294959104  ;;  %v966_v0 = vld [vmem:[#allocation5 + $0x78] sm:$0xff]   ;;  %v970_v4 = vld [vmem:[#allocation5 + $0x70] sm:$0xff]   ;;  %v1080_v22 = vmov 1983009808   ;;  %v56_v24 = vlaneseq }
  0x1a   :  { %v967_v1 = vld [vmem:[#allocation5 + $0xf8] sm:$0xff]   ;;  %873 = vmatprep.subr.bf16.mxu0 %v966_v0  ;;  %v971_v5 = vld [vmem:[#allocation5 + $0xf0] sm:$0xff]   ;;  %v974_v8 = vld [vmem:[#allocation5 + $0x68] sm:$0xff]   ;;  %v54_v23 = vunpack.c.l.s4 %v1080_v22  ;;  %vm792_vm1 = vcmask 1041408   ;;  %vm799_vm2 = vcmask 1024  }
  0x1b   :  { %v968_v2 = vld [vmem:[#allocation5 + $0x38] sm:$0xff]   ;;  %895 = vmatprep.subr.bf16.mxu1 %v967_v1  ;;  %v972_v6 = vld [vmem:[#allocation5 + $0x30] sm:$0xff]   ;;  %v975_v9 = vld [vmem:[#allocation5 + $0xe8] sm:$0xff]   ;;  %v57_v30 = vshrl.u32 %v56_v24, 7 }
  0x1c   :  { %v969_v3 = vld [vmem:[#allocation5 + $0xb8] sm:$0xff]   ;;  %874 = vmatpush3.bf16.msra.mxu0 %v968_v2  ;;  %v973_v7 = vld [vmem:[#allocation5 + $0xb0] sm:$0xff]   ;;  %v976_v10 = vld [vmem:[#allocation5 + $0x28] sm:$0xff]   ;;  %v55_v29 = vunpack.c.0.s8 %v54_v23 }
  0x1d   :  { %896 = vmatpush3.bf16.msra.mxu1 %v969_v3  ;;  %875 = vmatprep.subr.bf16.mxu0 %v970_v4  ;;  %v977_v11 = vld [vmem:[#allocation5 + $0xa8] sm:$0xff]   ;;  %v978_v12 = vld [vmem:[#allocation5 + $0x60] sm:$0xff]   ;;  %v982_v16 = vld [vmem:[#allocation5 + $0x58] sm:$0xff]  }
  0x1e   :  { %897 = vmatprep.subr.bf16.mxu1 %v971_v5  ;;  %v979_v13 = vld [vmem:[#allocation5 + $0xe0] sm:$0xff]   ;;  %v983_v17 = vld [vmem:[#allocation5 + $0xd8] sm:$0xff]   ;;  %v986_v20 = vld [vmem:[#allocation5 + $0x50] sm:$0xff]   ;;  %v1117_v35 = vsub.s32 %v55_v29, %v57_v30 }
  0x1f   :  { %v980_v14 = vld [vmem:[#allocation5 + $0x20] sm:$0xff]   ;;  %v984_v18 = vld [vmem:[#allocation5 + $0x18] sm:$0xff]   ;;  %v987_v21 = vld [vmem:[#allocation5 + $0xd0] sm:$0xff]  }
  0x20   :  { %876 = vmatpush3.bf16.msra.mxu0 %v972_v6  ;;  %v981_v15 = vld [vmem:[#allocation5 + $0xa0] sm:$0xff]   ;;  %v985_v19 = vld [vmem:[#allocation5 + $0x98] sm:$0xff]   ;;  %v988_v25 = vld [vmem:[#allocation5 + $0x10] sm:$0xff]  }
  0x21   :  { %898 = vmatpush3.bf16.msra.mxu1 %v973_v7  ;;  %877 = vmatprep.subr.bf16.mxu0 %v974_v8  ;;  %v989_v26 = vld [vmem:[#allocation5 + $0x90] sm:$0xff]   ;;  %v990_v27 = vld [vmem:[#allocation5 + $0x48] sm:$0xff]   ;;  %v994_v33 = vld [vmem:[#allocation5 + $0x40] sm:$0xff]  }
  0x22   :  { %899 = vmatprep.subr.bf16.mxu1 %v975_v9  ;;  %v991_v28 = vld [vmem:[#allocation5 + $0xc8] sm:$0xff]   ;;  %v995_v34 = vld [vmem:[#allocation5 + $0xc0] sm:$0xff]   ;;  %v48_v38 = vld [vmem:[#allocation3] sm:$0xff] }
  0x23   :  { %v992_v31 = vld [vmem:[#allocation5 + $0x8] sm:$0xff]   ;;  %v996_v36 = vld [vmem:[#allocation5] sm:$0xff]   ;;  %v59_v39 = vrot.slane %v48_v38, %v1117_v35  ;;  %v52_v40 = vcombine.high %v48_v38, %v48_v38  ;;  %v999_v41 = vld [vmem:[#allocation5 + $0x178] sm:$0xff]  }
  0x24   :  { %878 = vmatpush3.bf16.msra.mxu0 %v976_v10  ;;  %v993_v32 = vld [vmem:[#allocation5 + $0x88] sm:$0xff]   ;;  %v997_v37 = vld [vmem:[#allocation5 + $0x80] sm:$0xff]   ;;  %v1000_v42 = vld [vmem:[#allocation5 + $0x1f8] sm:$0xff]  }
  0x25   :  { %900 = vmatpush3.bf16.msra.mxu1 %v977_v11  ;;  %879 = vmatprep.subr.bf16.mxu0 %v978_v12  ;;  %v67_v43 = vcombine.high %v59_v39, %v59_v39  ;;  %v66_v44 = vrot.slane %v52_v40, %v1117_v35  ;;  %v94_v45 = vpack.c.bf16 %v59_v39, %v59_v39  ;;  %v1001_v48 = vld [vmem:[#allocation5 + $0x138] sm:$0xff]   ;;  %v1003_v50 = vld [vmem:[#allocation5 + $0x170] sm:$0xff]   ;;  %v1007_v55 = vld [vmem:[#allocation5 + $0x168] sm:$0xff]  }
  0x26   :  { %901 = vmatprep.subr.bf16.mxu1 %v979_v13  ;;  %v1002_v52 = vld [vmem:[#allocation5 + $0x1b8] sm:$0xff]   ;;  %v1004_v53 = vld [vmem:[#allocation5 + $0x1f0] sm:$0xff]   ;;  %v1008_v57 = vld [vmem:[#allocation5 + $0x1e8] sm:$0xff]  }
  0x27   :  { %v95_v46 = vpack.c.bf16 %v67_v43, %v67_v43  ;;  %v68_v47 = vcombine.high %v66_v44, %v66_v44  ;;  %v96_v49 = vpack.c.bf16 %v66_v44, %v66_v44  ;;  %v1005_v54 = vld [vmem:[#allocation5 + $0x130] sm:$0xff]   ;;  %v1009_v58 = vld [vmem:[#allocation5 + $0x128] sm:$0xff]   ;;  %v1011_v59 = vld [vmem:[#allocation5 + $0x160] sm:$0xff]  }
  0x28   :  { %880 = vmatpush3.bf16.msra.mxu0 %v980_v14  ;;  %v1006_v56 = vld [vmem:[#allocation5 + $0x1b0] sm:$0xff]   ;;  %v1010_v60 = vld [vmem:[#allocation5 + $0x1a8] sm:$0xff]   ;;  %v1012_v61 = vld [vmem:[#allocation5 + $0x1e0] sm:$0xff]  }
  0x29   :  { %902 = vmatpush3.bf16.msra.mxu1 %v981_v15  ;;  %881 = vmatprep.subr.bf16.mxu0 %v982_v16  ;;  %v97_v51 = vpack.c.bf16 %v68_v47, %v68_v47  ;;  %v1013_v62 = vld [vmem:[#allocation5 + $0x120] sm:$0xff]   ;;  %v1015_v63 = vld [vmem:[#allocation5 + $0x158] sm:$0xff]   ;;  %v1019_v3 = vld [vmem:[#allocation5 + $0x150] sm:$0xff]  }
  0x2a   :  { %903 = vmatprep.subr.bf16.mxu1 %v983_v17  ;;  %653 = vmatprep.mubr.bf16.mxu0 %v95_v46  ;;  %v1014_v0 = vld [vmem:[#allocation5 + $0x1a0] sm:$0xff]   ;;  %v1016_v1 = vld [vmem:[#allocation5 + $0x1d8] sm:$0xff]   ;;  %v1020_v5 = vld [vmem:[#allocation5 + $0x1d0] sm:$0xff]  }
  0x2b   :  { %693 = vmatprep.mubr.bf16.mxu1 %v97_v51  ;;  %v1017_v2 = vld [vmem:[#allocation5 + $0x118] sm:$0xff]   ;;  %v1021_v6 = vld [vmem:[#allocation5 + $0x110] sm:$0xff]   ;;  %v1023_v7 = vld [vmem:[#allocation5 + $0x148] sm:$0xff]  }
  0x2c   :  { %882 = vmatpush3.bf16.msra.mxu0 %v984_v18  ;;  %v1018_v4 = vld [vmem:[#allocation5 + $0x198] sm:$0xff]   ;;  %v1022_v8 = vld [vmem:[#allocation5 + $0x190] sm:$0xff]   ;;  %v1024_v9 = vld [vmem:[#allocation5 + $0x1c8] sm:$0xff]  }
  0x2d   :  { %904 = vmatpush3.bf16.msra.mxu1 %v985_v19  ;;  %883 = vmatprep.subr.bf16.mxu0 %v986_v20  ;;  %v1025_v10 = vld [vmem:[#allocation5 + $0x108] sm:$0xff]   ;;  %v1027_v11 = vld [vmem:[#allocation5 + $0x140] sm:$0xff]   ;;  %v49_v14 = vld [vmem:[#allocation3 + $0x8] sm:$0xff] }
  0x2e   :  { %905 = vmatprep.subr.bf16.mxu1 %v987_v21  ;;  %v1026_v12 = vld [vmem:[#allocation5 + $0x188] sm:$0xff]   ;;  %v1028_v13 = vld [vmem:[#allocation5 + $0x1c0] sm:$0xff]   ;;  %v76_v16 = vrot.slane %v49_v14, %v1117_v35  ;;  %v69_v17 = vcombine.high %v49_v14, %v49_v14 }
  0x2f   :  { %v1029_v15 = vld [vmem:[#allocation5 + $0x100] sm:$0xff]  }
  0x30   :  { %884 = vmatpush3.bf16.msra.mxu0 %v988_v25  ;;  %v1030_v18 = vld [vmem:[#allocation5 + $0x180] sm:$0xff]   ;;  %v84_v19 = vcombine.high %v76_v16, %v76_v16  ;;  %v83_v20 = vrot.slane %v69_v17, %v1117_v35  ;;  %v98_v21 = vpack.c.bf16 %v76_v16, %v76_v16  ;;  %v807_v35 = vld [vmem:[%s1137_s2] ss:$0 sm:$0xff] }
  0x31   :  { %906 = vmatpush3.bf16.msra.mxu1 %v989_v26  ;;  %885 = vmatprep.subr.bf16.mxu0 %v990_v27 }
  0x32   :  { %907 = vmatprep.subr.bf16.mxu1 %v991_v28  ;;  %v99_v22 = vpack.c.bf16 %v84_v19, %v84_v19  ;;  %v85_v23 = vcombine.high %v83_v20, %v83_v20  ;;  %v100_v24 = vpack.c.bf16 %v83_v20, %v83_v20 }
  0x34   :  { %886 = vmatpush3.bf16.msra.mxu0 %v992_v31  ;;  %v101_v25 = vpack.c.bf16 %v85_v23, %v85_v23 }
  0x35   :  { %908 = vmatpush3.bf16.msra.mxu1 %v993_v32  ;;  %887 = vmatprep.subr.bf16.mxu0 %v994_v33 }
  0x36   :  { %909 = vmatprep.subr.bf16.mxu1 %v995_v34 }
  0x38   :  { %888 = vmatpush3.bf16.msra.mxu0 %v996_v36 }
  0x39   :  { %910 = vmatpush3.bf16.msra.mxu1 %v997_v37  ;;  %917 = vmatprep.subr.bf16.mxu0 %v999_v41 }
  0x3a   :  { %939 = vmatprep.subr.bf16.mxu1 %v1000_v42 }
  0x3b   :  { %654 = vmatmul.mubr.bf16.vlgmr.msra.gmra.mxu0 %v94_v45 }
  0x3c   :  { %918 = vmatpush3.bf16.msra.mxu0 %v1001_v48  ;;  %694 = vmatmul.mubr.bf16.vlgmr.msra.gmra.mxu1 %v96_v49 }
  0x3d   :  { %919 = vmatprep.subr.bf16.mxu0 %v1003_v50  ;;  %940 = vmatpush3.bf16.msra.mxu1 %v1002_v52  ;;  %v872_v52 = vld [vmem:[%s1138_s3] ss:$0 sm:$0xff] }
  0x3e   :  { %941 = vmatprep.subr.bf16.mxu1 %v1004_v53  ;;  %733 = vmatprep.mubr.bf16.mxu0 %v99_v22 }
  0x3f   :  { %773 = vmatprep.mubr.bf16.mxu1 %v101_v25 }
  0x40   :  { %920 = vmatpush3.bf16.msra.mxu0 %v1005_v54 }
  0x41   :  { %921 = vmatprep.subr.bf16.mxu0 %v1007_v55  ;;  %942 = vmatpush3.bf16.msra.mxu1 %v1006_v56  ;;  %v797_v56 = vstv %s1139_s4 }
  0x42   :  { %943 = vmatprep.subr.bf16.mxu1 %v1008_v57 }
  0x44   :  { %922 = vmatpush3.bf16.msra.mxu0 %v1009_v58 }
  0x45   :  { %923 = vmatprep.subr.bf16.mxu0 %v1011_v59  ;;  %944 = vmatpush3.bf16.msra.mxu1 %v1010_v60 }
  0x46   :  { %945 = vmatprep.subr.bf16.mxu1 %v1012_v61 }
  0x48   :  { %924 = vmatpush3.bf16.msra.mxu0 %v1013_v62 }
  0x49   :  { %925 = vmatprep.subr.bf16.mxu0 %v1015_v63  ;;  %946 = vmatpush3.bf16.msra.mxu1 %v1014_v0 }
  0x4a   :  { %947 = vmatprep.subr.bf16.mxu1 %v1016_v1 }
  0x4c   :  { %926 = vmatpush3.bf16.msra.mxu0 %v1017_v2 }
  0x4d   :  { %927 = vmatprep.subr.bf16.mxu0 %v1019_v3  ;;  %948 = vmatpush3.bf16.msra.mxu1 %v1018_v4 }
  0x4e   :  { %949 = vmatprep.subr.bf16.mxu1 %v1020_v5 }
  0x50   :  { %928 = vmatpush3.bf16.msra.mxu0 %v1021_v6 }
  0x51   :  { %929 = vmatprep.subr.bf16.mxu0 %v1023_v7  ;;  %950 = vmatpush3.bf16.msra.mxu1 %v1022_v8 }
  0x52   :  { %951 = vmatprep.subr.bf16.mxu1 %v1024_v9 }
  0x54   :  { %930 = vmatpush3.bf16.msra.mxu0 %v1025_v10 }
  0x55   :  { %931 = vmatprep.subr.bf16.mxu0 %v1027_v11  ;;  %952 = vmatpush3.bf16.msra.mxu1 %v1026_v12 }
  0x56   :  { %953 = vmatprep.subr.bf16.mxu1 %v1028_v13 }
  0x58   :  { %932 = vmatpush3.bf16.msra.mxu0 %v1029_v15 }
  0x59   :  { %954 = vmatpush3.bf16.msra.mxu1 %v1030_v18 }
  0x5b   :  { %734 = vmatmul.mubr.bf16.vlgmr.msra.gmra.mxu0 %v98_v21 }
  0x5c   :  { %774 = vmatmul.mubr.bf16.vlgmr.msra.gmra.mxu1 %v100_v24 }
  0xfb   :  { %v889_v26 = vpop.f32.mrf.mxu0 }
  0xfc   :  { %v911_v27 = vpop.f32.mrf.mxu1 }
  0xfd   :  { %v890_v28 = vpop.f32.mrf.mxu0 }
  0xfe   :  { %v912_v29 = vpop.f32.mrf.mxu1  ;;  %v891_v34 = vadd.f32 %v890_v28, %v889_v26 }
  0xff   :  { %v892_v30 = vpop.f32.mrf.mxu0  ;;  %v913_v37 = vadd.f32 %v912_v29, %v911_v27 }
 0x100   :  { %v914_v31 = vpop.f32.mrf.mxu1  ;;  %v656_v36 = vadd.f32 %v891_v34, %v807_v35 }
 0x101   :  { %v893_v32 = vpop.f32.mrf.mxu0 }
 0x102   :  { %v915_v33 = vpop.f32.mrf.mxu1  ;;  %v696_v41 = vadd.f32 %v913_v37, %v656_v36 }
 0x11b   :  { %v933_v38 = vpop.f32.mrf.mxu0 }
 0x11c   :  { %v955_v39 = vpop.f32.mrf.mxu1 }
 0x11d   :  { %v934_v40 = vpop.f32.mrf.mxu0 }
 0x11e   :  { %v935_v42 = vadd.f32 %v934_v40, %v933_v38  ;;  %v956_v43 = vpop.f32.mrf.mxu1 }
 0x11f   :  { %v936_v44 = vpop.f32.mrf.mxu0  ;;  %v957_v46 = vadd.f32 %v956_v43, %v955_v39 }
 0x120   :  { %v736_v45 = vadd.f32 %v935_v42, %v696_v41  ;;  %v958_v47 = vpop.f32.mrf.mxu1 }
 0x121   :  { %v937_v48 = vpop.f32.mrf.mxu0 }
 0x122   :  { %v776_v49 = vadd.f32 %v957_v46, %v736_v45  ;;  %v959_v50 = vpop.f32.mrf.mxu1 }
 0x124   :  { %v782_v51 = vmul.f32 0.01, %v776_v49  ;;  %vm781_vm0 = vcmp.gt.f32.partialorder %v776_v49, 0.0 }
 0x126   :  { %v783_v53 = vsel %vm781_vm0, %v776_v49, %v782_v51 }
 0x127   :  { %v791_v54 = vmul.f32 %v872_v52, %v783_v53 }
 0x129   :  { %v793_v55 = vsel %vm792_vm1, %v791_v54, 0.0 }
 0x12a   :  { %794 = vadd.xlane.f32.xlu0 %v793_v55 }
 0x1b3   :  { %v795_v57 = vpop.xlane.xlu0 %794 }
 0x1b4   :  { %v798_v58 = vadd.f32 %v797_v56, %v795_v57 }
 0x1b6   :  { %800 = vst.msk [vmem:[%s1140_s5] sm:$0x3] %vm799_vm2, %v798_v58 }
 0x1b7   :  { %805 = vsyncpa [#allocation4], 1 }
 0x1b8   :  { %806 = vsyncpa [#allocation6], 1 }

</bundles_post_ra>
